<compile_context>
chip_gen: v7x
topology: tpu7x:2x2x1
jax: 0.10.0
libtpu: 0.0.40
codegen_flags: <defaults>
</compile_context>

<pallas_src>
import functools

import jax
import jax.numpy as jnp
from jax import lax
from jax.experimental import pallas as pl
from jax.experimental.pallas import tpu as pltpu

EMB_DIM = 768  # fixed by the torch module (embedding_dim=768, lstm input_size=768)


# ----------------------------------------------------------------------------
# helpers
# ----------------------------------------------------------------------------
def _largest_divisor_leq(n, cap):
    best = 1
    for d in range(1, n + 1):
        if n % d == 0 and d <= cap:
            best = d
    return best


def _pick_lstm_t_chunk(T, Bp, Din, H, budget_bytes=20 << 20):
    # f32 bytes per timestep of chunk-resident buffers:
    # 4 double-buffered x blocks, 2 xg scratch blocks (4H), 2 double-buffered out blocks (H)
    per_t = 4 * Bp * (2 * 2 * Din + 2 * 4 * H + 2 * 2 * H)
    cap = max(1, budget_bytes // max(per_t, 1))
    return _largest_divisor_leq(T, min(cap, 256))


def _pick_linear_t_chunk(T, cap=128):
    # the output block puts T on the second-to-last dim, so the chunk must be a
    # multiple of 8 (f32 sublanes) or the full T.
    best = T
    for d in range(8, T, 8):
        if T % d == 0 and d <= cap:
            best = d
    return best


# ----------------------------------------------------------------------------
# Embedding gather: HBM table + scalar-prefetched ids + overlapped row DMAs.
# Output is time-major (T, B, D/2) x 2 halves.
# ----------------------------------------------------------------------------
def _embed_gather_kernel(ids_ref, emb_ref, out_a_ref, out_b_ref, row_buf, sems):
    # ids_ref: SMEM (T*Bp,) int32 (time-major), emb_ref: HBM (V, D)
    # out_a_ref/out_b_ref: VMEM (1, Bp, D/2), row_buf: VMEM (Bp, D), sems: DMA (Bp,)
    t = pl.program_id(0)
    bp = row_buf.shape[0]
    d = row_buf.shape[1]
    dh = out_a_ref.shape[2]
    v = emb_ref.shape[0]

    # issue all row DMAs for this timestep, then wait -> overlapped HBM reads
    for j in range(bp):
        row = jnp.clip(ids_ref[t * bp + j], 0, v - 1)  # clamp untrusted ids (OOB safety)
        pltpu.make_async_copy(emb_ref.at[row], row_buf.at[j], sems.at[j]).start()
    for j in range(bp):
        pltpu.make_async_copy(emb_ref.at[0], row_buf.at[j], sems.at[j]).wait()

    rows = row_buf[...]                      # (Bp, D)
    out_a_ref[...] = rows[:, 0:dh][None]     # first half of the embedding
    out_b_ref[...] = rows[:, dh:d][None]     # second half


def embedding_lookup_time_major(ids_padded, emb_table):
    Bp, T = ids_padded.shape
    V, D = emb_table.shape
    Dh = D // 2
    ids_tm = ids_padded.T.reshape(-1).astype(jnp.int32)  # time-major flat ids

    grid_spec = pltpu.PrefetchScalarGridSpec(
        num_scalar_prefetch=1,
        grid=(T,),
        in_specs=[pl.BlockSpec(memory_space=pl.ANY)],                 # table stays in HBM
        out_specs=[pl.BlockSpec((1, Bp, Dh), lambda t, ids: (t, 0, 0)),
                   pl.BlockSpec((1, Bp, Dh), lambda t, ids: (t, 0, 0))],
        scratch_shapes=[pltpu.VMEM((Bp, D), emb_table.dtype),
                        pltpu.SemaphoreType.DMA((Bp,))],
    )
    out_a, out_b = pl.pallas_call(
        _embed_gather_kernel,
        grid_spec=grid_spec,
        out_shape=[jax.ShapeDtypeStruct((T, Bp, Dh), emb_table.dtype),
                   jax.ShapeDtypeStruct((T, Bp, Dh), emb_table.dtype)],
        compiler_params=pltpu.CompilerParams(
            dimension_semantics=("arbitrary",),
            vmem_limit_bytes=32 * 1024 * 1024),
    )(ids_tm, emb_table)
    return out_a, out_b


# ----------------------------------------------------------------------------
# Fused bidirectional LSTM layer, tiled over T-chunks.
#   inputs x = (x_a, x_b) halves in time-major; chunk k feeds the forward direction,
#   chunk K-1-k feeds the backward direction. One block-diagonal W_hh matmul per step
#   drives both directions; h/c are loop-carried and persisted across chunks in a tiny
#   VMEM scratch.
# ----------------------------------------------------------------------------
def _bilstm_chunk_kernel(xa_f_ref, xb_f_ref, xa_b_ref, xb_b_ref,
                         wih_f_ref, wih_b_ref, whh_bd_ref, bias_ref,
                         out_f_ref, out_b_ref,
                         h_ref, c_ref, xg_f_ref, xg_b_ref, *, mxu_bf16):
    k = pl.program_id(0)
    Tc, Bp, Da = xa_f_ref.shape
    Db = xb_f_ref.shape[2]
    H = out_f_ref.shape[2]
    G = 4 * H

    @pl.when(k == 0)
    def _init_state():
        h_ref[...] = jnp.zeros_like(h_ref)
        c_ref[...] = jnp.zeros_like(c_ref)

    # -- chunk input projection (both directions): big MXU matmuls --------------
    def project(xa_ref, xb_ref, w_ref, dst_ref):
        x = jnp.concatenate([xa_ref[...], xb_ref[...]], axis=-1)
        x = x.reshape(Tc * Bp, Da + Db)
        w = w_ref[...]
        if mxu_bf16:  # v6e/v7x: bf16 MXU inputs, f32 accumulation
            x = x.astype(jnp.bfloat16)
            w = w.astype(jnp.bfloat16)
        xg = lax.dot_general(x, w,
                             dimension_numbers=(((1,), (1,)), ((), ())),
                             preferred_element_type=jnp.float32)
        dst_ref[...] = xg.reshape(Tc, Bp, G)

    project(xa_f_ref, xb_f_ref, wih_f_ref, xg_f_ref)   # forward-direction gates (pre-act)
    project(xa_b_ref, xb_b_ref, wih_b_ref, xg_b_ref)   # backward-direction gates (pre-act)

    whh_bd = whh_bd_ref[...]   # (2H, 8H) block-diag [W_hh_f^T | W_hh_b^T]  (hoisted)
    bias = bias_ref[...]       # (1, 8H)  = [b_ih_f+b_hh_f | b_ih_b+b_hh_b] (hoisted)

    # -- sequential recurrence over the chunk; h/c loop-carried in vregs --------
    def step(j, carry):
        h_cat, c_cat = carry                                   # (Bp, 2H) each
        xg_f = xg_f_ref[pl.ds(j, 1), :, :][0]                  # (Bp, 4H)
        xg_b = xg_b_ref[pl.ds(Tc - 1 - j, 1), :, :][0]         # (Bp, 4H)
        hh = lax.dot_general(h_cat, whh_bd,
                             dimension_numbers=(((1,), (0,)), ((), ())),
                             preferred_element_type=jnp.float32)  # (Bp, 8H), both dirs
        gates = jnp.concatenate([xg_f, xg_b], axis=-1) + hh + bias
        # PyTorch gate order per direction: i, f, g, o (each H wide);
        # layout: [i_f f_f g_f o_f | i_b f_b g_b o_b]
        i_g = jnp.concatenate([gates[:, 0 * H:1 * H], gates[:, 4 * H:5 * H]], axis=-1)
        f_g = jnp.concatenate([gates[:, 1 * H:2 * H], gates[:, 5 * H:6 * H]], axis=-1)
        g_g = jnp.concatenate([gates[:, 2 * H:3 * H], gates[:, 6 * H:7 * H]], axis=-1)
        o_g = jnp.concatenate([gates[:, 3 * H:4 * H], gates[:, 7 * H:8 * H]], axis=-1)
        c_new = jax.nn.sigmoid(f_g) * c_cat + jax.nn.sigmoid(i_g) * jnp.tanh(g_g)
        h_new = jax.nn.sigmoid(o_g) * jnp.tanh(c_new)          # (Bp, 2H)
        out_f_ref[pl.ds(j, 1), :, :] = h_new[:, 0:H][None]
        out_b_ref[pl.ds(Tc - 1 - j, 1), :, :] = h_new[:, H:2 * H][None]
        return (h_new, c_new)

    h_fin, c_fin = lax.fori_loop(0, Tc, step, (h_ref[...], c_ref[...]), unroll=2)
    h_ref[...] = h_fin
    c_ref[...] = c_fin


def bilstm_layer(x_a, x_b, w_ih_f, w_ih_b, w_hh_bd, bias, *, hidden, t_chunk,
                 mxu_bf16=False):
    T, Bp, Da = x_a.shape
    Db = x_b.shape[2]
    H = hidden
    assert T % t_chunk == 0
    K = T // t_chunk

    kernel = functools.partial(_bilstm_chunk_kernel, mxu_bf16=mxu_bf16)
    in_specs = [
        pl.BlockSpec((t_chunk, Bp, Da), lambda k: (k, 0, 0)),          # x_a, fwd chunk
        pl.BlockSpec((t_chunk, Bp, Db), lambda k: (k, 0, 0)),          # x_b, fwd chunk
        pl.BlockSpec((t_chunk, Bp, Da), lambda k: (K - 1 - k, 0, 0)),  # x_a, bwd chunk
        pl.BlockSpec((t_chunk, Bp, Db), lambda k: (K - 1 - k, 0, 0)),  # x_b, bwd chunk
        pl.BlockSpec((4 * H, Da + Db), lambda k: (0, 0)),              # W_ih fwd (resident)
        pl.BlockSpec((4 * H, Da + Db), lambda k: (0, 0)),              # W_ih bwd (resident)
        pl.BlockSpec((2 * H, 8 * H), lambda k: (0, 0)),                # block-diag W_hh
        pl.BlockSpec((1, 8 * H), lambda k: (0, 0)),                    # fused bias
    ]
    out_specs = [
        pl.BlockSpec((t_chunk, Bp, H), lambda k: (k, 0, 0)),           # forward h
        pl.BlockSpec((t_chunk, Bp, H), lambda k: (K - 1 - k, 0, 0)),   # backward h
    ]
    scratch_shapes = [
        pltpu.VMEM((Bp, 2 * H), jnp.float32),            # h state across chunks
        pltpu.VMEM((Bp, 2 * H), jnp.float32),            # c state across chunks
        pltpu.VMEM((t_chunk, Bp, 4 * H), jnp.float32),   # xg fwd (chunk)
        pltpu.VMEM((t_chunk, Bp, 4 * H), jnp.float32),   # xg bwd (chunk)
    ]
    out_f, out_b = pl.pallas_call(
        kernel,
        grid=(K,),
        in_specs=in_specs,
        out_specs=out_specs,
        out_shape=[jax.ShapeDtypeStruct((T, Bp, H), jnp.float32),
                   jax.ShapeDtypeStruct((T, Bp, H), jnp.float32)],
        scratch_shapes=scratch_shapes,
        compiler_params=pltpu.CompilerParams(
            dimension_semantics=("arbitrary",),          # sequential recurrence over chunks
            vmem_limit_bytes=32 * 1024 * 1024),
    )(x_a, x_b, x_a, x_b, w_ih_f, w_ih_b, w_hh_bd, bias)
    return out_f, out_b


# ----------------------------------------------------------------------------
# Linear head: y = [h_f | h_b] @ W^T + b, classes padded to 128 lanes, output
# written directly in (B, T, Cpad) layout (transpose folded into the store).
# ----------------------------------------------------------------------------
def _linear_head_kernel(hf_ref, hb_ref, wf_ref, wb_ref, b_ref, out_ref):
    Tc, Bp, H = hf_ref.shape
    Cp = wf_ref.shape[0]
    y = lax.dot_general(hf_ref[...].reshape(Tc * Bp, H), wf_ref[...],
                        dimension_numbers=(((1,), (1,)), ((), ())),
                        preferred_element_type=jnp.float32)
    y = y + lax.dot_general(hb_ref[...].reshape(Tc * Bp, H), wb_ref[...],
                            dimension_numbers=(((1,), (1,)), ((), ())),
                            preferred_element_type=jnp.float32)
    y = y.reshape(Tc, Bp, Cp) + b_ref[...][None, :, :]
    for jb in range(Bp):  # (Tc, Bp, Cp) -> (Bp, Tc, Cp): fold transpose into the stores
        out_ref[pl.ds(jb, 1), :, :] = y[:, jb, :][None]


def linear_head(h_f, h_b, w_f, w_b, b, *, t_chunk):
    T, Bp, H = h_f.shape
    Cp = w_f.shape[0]
    assert T % t_chunk == 0
    K = T // t_chunk
    return pl.pallas_call(
        _linear_head_kernel,
        grid=(K,),
        in_specs=[
            pl.BlockSpec((t_chunk, Bp, H), lambda i: (i, 0, 0)),
            pl.BlockSpec((t_chunk, Bp, H), lambda i: (i, 0, 0)),
            pl.BlockSpec((Cp, H), lambda i: (0, 0)),
            pl.BlockSpec((Cp, H), lambda i: (0, 0)),
            pl.BlockSpec((1, Cp), lambda i: (0, 0)),
        ],
        out_specs=pl.BlockSpec((Bp, t_chunk, Cp), lambda i: (0, i, 0)),
        out_shape=jax.ShapeDtypeStruct((Bp, T, Cp), jnp.float32),
        compiler_params=pltpu.CompilerParams(
            dimension_semantics=("parallel",),
            vmem_limit_bytes=32 * 1024 * 1024),
    )(h_f, h_b, w_f, w_b, b)


# ----------------------------------------------------------------------------
# Full forward (wrapper only does cheap parameter-layout prep + final slice).
# ----------------------------------------------------------------------------
def lstm_segmenter_forward(params, input_ids, *, t_chunk=None, mxu_bf16=False):
    B, T = input_ids.shape
    emb_table = params["embedding"]
    H = params["lstm_layers"][0]["w_hh_f"].shape[1]
    C = params["w_out"].shape[0]

    # pad batch to a sublane multiple (pure layout; sliced off at the end)
    Bp = max(8, ((B + 7) // 8) * 8)
    ids = jnp.zeros((Bp, T), jnp.int32).at[:B].set(input_ids.astype(jnp.int32))

    # embedding gather: time-major output, split into two halves (no HBM concat later)
    x_a, x_b = embedding_lookup_time_major(ids, emb_table)   # each (T, Bp, 384)

    if t_chunk is None:
        t_chunk = _pick_lstm_t_chunk(T, Bp, EMB_DIM, H)
    assert T % t_chunk == 0

    for layer in params["lstm_layers"]:
        # one-time weight layout prep: block-diagonal W_hh and fused bias
        w_hh_bd = jnp.zeros((2 * H, 8 * H), jnp.float32)
        w_hh_bd = w_hh_bd.at[:H, :4 * H].set(layer["w_hh_f"].T)
        w_hh_bd = w_hh_bd.at[H:, 4 * H:].set(layer["w_hh_b"].T)
        bias = jnp.concatenate([layer["b_f"], layer["b_b"]], axis=1)   # (1, 8H)
        x_a, x_b = bilstm_layer(x_a, x_b, layer["w_ih_f"], layer["w_ih_b"],
                                w_hh_bd, bias, hidden=H, t_chunk=t_chunk,
                                mxu_bf16=mxu_bf16)            # each (T, Bp, H)

    # linear head: classes padded to a full lane width
    Cp = max(128, ((C + 127) // 128) * 128)
    w_pad = jnp.zeros((Cp, 2 * H), jnp.float32).at[:C].set(params["w_out"])
    b_pad = jnp.zeros((1, Cp), jnp.float32).at[:, :C].set(params["b_out"])
    tc_lin = _pick_linear_t_chunk(T)
    logits_pad = linear_head(x_a, x_b, w_pad[:, :H], w_pad[:, H:], b_pad,
                             t_chunk=tc_lin)                   # (Bp, T, Cp)
    return {"logits": logits_pad[:B, :, :C]}


# ----------------------------------------------------------------------------
# Deterministic parameter init (shapes follow the torch module __init__).
# ----------------------------------------------------------------------------
def init_params(key, *, num_embeddings, pad_id, hidden, num_layers, num_classes):
    k_emb, k_lstm, k_lin = jax.random.split(key, 3)

    emb = jax.random.normal(k_emb, (num_embeddings, EMB_DIM), jnp.float32)
    emb = emb.at[pad_id].set(0.0)  # nn.Embedding zero-inits the padding_idx row

    bound = float(hidden) ** -0.5
    layers = []
    lstm_keys = jax.random.split(k_lstm, num_layers)
    for l in range(num_layers):
        d_in = EMB_DIM if l == 0 else 2 * hidden
        ks = jax.random.split(lstm_keys[l], 8)
        u = lambda k, s: jax.random.uniform(k, s, jnp.float32, -bound, bound)
        layers.append(dict(
            w_ih_f=u(ks[0], (4 * hidden, d_in)),
            w_hh_f=u(ks[1], (4 * hidden, hidden)),
            b_f=u(ks[2], (1, 4 * hidden)) + u(ks[3], (1, 4 * hidden)),   # b_ih + b_hh
            w_ih_b=u(ks[4], (4 * hidden, d_in)),
            w_hh_b=u(ks[5], (4 * hidden, hidden)),
            b_b=u(ks[6], (1, 4 * hidden)) + u(ks[7], (1, 4 * hidden)),
        ))

    lb = float(2 * hidden) ** -0.5
    kw, kb = jax.random.split(k_lin)
    w_out = jax.random.uniform(kw, (num_classes, 2 * hidden), jnp.float32, -lb, lb)
    b_out = jax.random.uniform(kb, (1, num_classes), jnp.float32, -lb, lb)

    return dict(embedding=emb, lstm_layers=layers, w_out=w_out, b_out=b_out)


# ----------------------------------------------------------------------------
# Pure-JAX reference for correctness checking (same math as torch forward).
# ----------------------------------------------------------------------------
def reference_forward(params, input_ids):
    out = params["embedding"][input_ids]  # (B, T, 768)

    def run_dir(x, w_ih, w_hh, b):
        B, T, _ = x.shape
        H = w_hh.shape[1]

        def step(carry, x_t):
            h, c = carry
            gates = x_t @ w_ih.T + h @ w_hh.T + b[0]
            i, f, g, o = jnp.split(gates, 4, axis=-1)
            c = jax.nn.sigmoid(f) * c + jax.nn.sigmoid(i) * jnp.tanh(g)
            h = jax.nn.sigmoid(o) * jnp.tanh(c)
            return (h, c), h

        init = (jnp.zeros((B, H)), jnp.zeros((B, H)))
        _, hs = lax.scan(step, init, jnp.swapaxes(x, 0, 1))
        return jnp.swapaxes(hs, 0, 1)

    for layer in params["lstm_layers"]:
        fwd = run_dir(out, layer["w_ih_f"], layer["w_hh_f"], layer["b_f"])
        bwd = run_dir(out[:, ::-1, :], layer["w_ih_b"], layer["w_hh_b"], layer["b_b"])[:, ::-1, :]
        out = jnp.concatenate([fwd, bwd], axis=-1)

    return out @ params["w_out"].T + params["b_out"][0]


if __name__ == "__main__":
    B, T = 2, 8
    HIDDEN = 32
    NUM_LAYERS = 2
    NUM_EMBEDDINGS = 64
    PAD_ID = 0
    NUM_CLASSES = 4

    key = jax.random.PRNGKey(0)
    k_params, k_ids = jax.random.split(key)
    params = init_params(
        k_params,
        num_embeddings=NUM_EMBEDDINGS,
        pad_id=PAD_ID,
        hidden=HIDDEN,
        num_layers=NUM_LAYERS,
        num_classes=NUM_CLASSES,
    )
    input_ids = jax.random.randint(k_ids, (B, T), 1, NUM_EMBEDDINGS, dtype=jnp.int32)
    input_ids = input_ids.at[:, -2:].set(PAD_ID)  # some padding tokens

    # t_chunk=4 exercises the multi-chunk (pipelined, state-carrying) grid path.
    out = lstm_segmenter_forward(params, input_ids, t_chunk=4, mxu_bf16=False)
    logits = jax.block_until_ready(out["logits"])

    ref = jax.block_until_ready(reference_forward(params, input_ids))
    assert logits.shape == (B, T, NUM_CLASSES)
    assert jnp.allclose(logits, ref, atol=1e-4, rtol=1e-4), "mismatch vs JAX reference"

    print("KERNEL_OK")
</pallas_src>

<mosaic_0001>
module attributes {stable_mosaic.version = 11 : i64} {
  func.func @_embed_gather_kernel(%arg0: i32, %arg1: memref<64xi32, #tpu.memory_space<smem>>, %arg2: memref<64x768xf32, #tpu.memory_space<any>>, %arg3: memref<1x8x384xf32, #tpu.memory_space<vmem>>, %arg4: memref<1x8x384xf32, #tpu.memory_space<vmem>>, %arg5: memref<8x768xf32, #tpu.memory_space<vmem>>, %arg6: memref<8x!tpu.dma_semaphore, #tpu.memory_space<semaphore_mem>>) attributes {dimension_semantics = [#tpu.dimension_semantics<arbitrary>], iteration_bounds = array<i64: 8>, scalar_prefetch = 1 : i64, scratch_operands = 2 : i64, tpu.core_type = #tpu.core_type<tc>, window_params = [{}, {transform_indices = @transform_1, window_bounds = array<i64: 1, 8, 384>}, {transform_indices = @transform_2, window_bounds = array<i64: 1, 8, 384>}]} {
    %c8_i32 = arith.constant 8 : i32
    %0 = arith.muli %arg0, %c8_i32 : i32
    %c0_i32 = arith.constant 0 : i32
    %1 = arith.addi %0, %c0_i32 : i32
    %2 = arith.index_cast %1 : i32 to index
    %3 = memref.load %arg1[%2] : memref<64xi32, #tpu.memory_space<smem>>
    %c0_i32_0 = arith.constant 0 : i32
    %c63_i32 = arith.constant 63 : i32
    %4 = arith.maxsi %c0_i32_0, %3 : i32
    %5 = arith.minsi %c63_i32, %4 : i32
    %c0_i32_1 = arith.constant 0 : i32
    %c0_i32_2 = arith.constant 0 : i32
    %c0_i32_3 = arith.constant 0 : i32
    %6 = tpu.memref_slice %arg2[%5, %c0_i32_3] : memref<64x768xf32, #tpu.memory_space<any>> -> memref<1x768xf32, #tpu.memory_space<any>>
    %7 = tpu.memref_squeeze %6 : memref<1x768xf32, #tpu.memory_space<any>> -> memref<768xf32, #tpu.memory_space<any>>
    %c0_i32_4 = arith.constant 0 : i32
    %8 = tpu.memref_slice %arg5[%c0_i32_1, %c0_i32_4] : memref<8x768xf32, #tpu.memory_space<vmem>> -> memref<1x768xf32, #tpu.memory_space<vmem>>
    %9 = tpu.memref_squeeze %8 : memref<1x768xf32, #tpu.memory_space<vmem>> -> memref<768xf32, #tpu.memory_space<vmem>>
    %10 = tpu.memref_slice %arg6[%c0_i32_2] : memref<8x!tpu.dma_semaphore, #tpu.memory_space<semaphore_mem>> -> memref<1x!tpu.dma_semaphore, #tpu.memory_space<semaphore_mem>>
    %11 = tpu.memref_squeeze %10 : memref<1x!tpu.dma_semaphore, #tpu.memory_space<semaphore_mem>> -> memref<!tpu.dma_semaphore, #tpu.memory_space<semaphore_mem>>
    tpu.enqueue_dma source(%7 : memref<768xf32, #tpu.memory_space<any>>) target(%9 : memref<768xf32, #tpu.memory_space<vmem>>) target_semaphore(%11 : memref<!tpu.dma_semaphore, #tpu.memory_space<semaphore_mem>>)
    %c8_i32_5 = arith.constant 8 : i32
    %12 = arith.muli %arg0, %c8_i32_5 : i32
    %c1_i32 = arith.constant 1 : i32
    %13 = arith.addi %12, %c1_i32 : i32
    %14 = arith.index_cast %13 : i32 to index
    %15 = memref.load %arg1[%14] : memref<64xi32, #tpu.memory_space<smem>>
    %c0_i32_6 = arith.constant 0 : i32
    %c63_i32_7 = arith.constant 63 : i32
    %16 = arith.maxsi %c0_i32_6, %15 : i32
    %17 = arith.minsi %c63_i32_7, %16 : i32
    %c1_i32_8 = arith.constant 1 : i32
    %c1_i32_9 = arith.constant 1 : i32
    %c0_i32_10 = arith.constant 0 : i32
    %18 = tpu.memref_slice %arg2[%17, %c0_i32_10] : memref<64x768xf32, #tpu.memory_space<any>> -> memref<1x768xf32, #tpu.memory_space<any>>
    %19 = tpu.memref_squeeze %18 : memref<1x768xf32, #tpu.memory_space<any>> -> memref<768xf32, #tpu.memory_space<any>>
    %c0_i32_11 = arith.constant 0 : i32
    %20 = tpu.memref_slice %arg5[%c1_i32_8, %c0_i32_11] : memref<8x768xf32, #tpu.memory_space<vmem>> -> memref<1x768xf32, #tpu.memory_space<vmem>>
    %21 = tpu.memref_squeeze %20 : memref<1x768xf32, #tpu.memory_space<vmem>> -> memref<768xf32, #tpu.memory_space<vmem>>
    %22 = tpu.memref_slice %arg6[%c1_i32_9] : memref<8x!tpu.dma_semaphore, #tpu.memory_space<semaphore_mem>> -> memref<1x!tpu.dma_semaphore, #tpu.memory_space<semaphore_mem>>
    %23 = tpu.memref_squeeze %22 : memref<1x!tpu.dma_semaphore, #tpu.memory_space<semaphore_mem>> -> memref<!tpu.dma_semaphore, #tpu.memory_space<semaphore_mem>>
    tpu.enqueue_dma source(%19 : memref<768xf32, #tpu.memory_space<any>>) target(%21 : memref<768xf32, #tpu.memory_space<vmem>>) target_semaphore(%23 : memref<!tpu.dma_semaphore, #tpu.memory_space<semaphore_mem>>)
    %c8_i32_12 = arith.constant 8 : i32
    %24 = arith.muli %arg0, %c8_i32_12 : i32
    %c2_i32 = arith.constant 2 : i32
    %25 = arith.addi %24, %c2_i32 : i32
    %26 = arith.index_cast %25 : i32 to index
    %27 = memref.load %arg1[%26] : memref<64xi32, #tpu.memory_space<smem>>
    %c0_i32_13 = arith.constant 0 : i32
    %c63_i32_14 = arith.constant 63 : i32
    %28 = arith.maxsi %c0_i32_13, %27 : i32
    %29 = arith.minsi %c63_i32_14, %28 : i32
    %c2_i32_15 = arith.constant 2 : i32
    %c2_i32_16 = arith.constant 2 : i32
    %c0_i32_17 = arith.constant 0 : i32
    %30 = tpu.memref_slice %arg2[%29, %c0_i32_17] : memref<64x768xf32, #tpu.memory_space<any>> -> memref<1x768xf32, #tpu.memory_space<any>>
    %31 = tpu.memref_squeeze %30 : memref<1x768xf32, #tpu.memory_space<any>> -> memref<768xf32, #tpu.memory_space<any>>
    %c0_i32_18 = arith.constant 0 : i32
    %32 = tpu.memref_slice %arg5[%c2_i32_15, %c0_i32_18] : memref<8x768xf32, #tpu.memory_space<vmem>> -> memref<1x768xf32, #tpu.memory_space<vmem>>
    %33 = tpu.memref_squeeze %32 : memref<1x768xf32, #tpu.memory_space<vmem>> -> memref<768xf32, #tpu.memory_space<vmem>>
    %34 = tpu.memref_slice %arg6[%c2_i32_16] : memref<8x!tpu.dma_semaphore, #tpu.memory_space<semaphore_mem>> -> memref<1x!tpu.dma_semaphore, #tpu.memory_space<semaphore_mem>>
    %35 = tpu.memref_squeeze %34 : memref<1x!tpu.dma_semaphore, #tpu.memory_space<semaphore_mem>> -> memref<!tpu.dma_semaphore, #tpu.memory_space<semaphore_mem>>
    tpu.enqueue_dma source(%31 : memref<768xf32, #tpu.memory_space<any>>) target(%33 : memref<768xf32, #tpu.memory_space<vmem>>) target_semaphore(%35 : memref<!tpu.dma_semaphore, #tpu.memory_space<semaphore_mem>>)
    %c8_i32_19 = arith.constant 8 : i32
    %36 = arith.muli %arg0, %c8_i32_19 : i32
    %c3_i32 = arith.constant 3 : i32
    %37 = arith.addi %36, %c3_i32 : i32
    %38 = arith.index_cast %37 : i32 to index
    %39 = memref.load %arg1[%38] : memref<64xi32, #tpu.memory_space<smem>>
    %c0_i32_20 = arith.constant 0 : i32
    %c63_i32_21 = arith.constant 63 : i32
    %40 = arith.maxsi %c0_i32_20, %39 : i32
    %41 = arith.minsi %c63_i32_21, %40 : i32
    %c3_i32_22 = arith.constant 3 : i32
    %c3_i32_23 = arith.constant 3 : i32
    %c0_i32_24 = arith.constant 0 : i32
    %42 = tpu.memref_slice %arg2[%41, %c0_i32_24] : memref<64x768xf32, #tpu.memory_space<any>> -> memref<1x768xf32, #tpu.memory_space<any>>
    %43 = tpu.memref_squeeze %42 : memref<1x768xf32, #tpu.memory_space<any>> -> memref<768xf32, #tpu.memory_space<any>>
    %c0_i32_25 = arith.constant 0 : i32
    %44 = tpu.memref_slice %arg5[%c3_i32_22, %c0_i32_25] : memref<8x768xf32, #tpu.memory_space<vmem>> -> memref<1x768xf32, #tpu.memory_space<vmem>>
    %45 = tpu.memref_squeeze %44 : memref<1x768xf32, #tpu.memory_space<vmem>> -> memref<768xf32, #tpu.memory_space<vmem>>
    %46 = tpu.memref_slice %arg6[%c3_i32_23] : memref<8x!tpu.dma_semaphore, #tpu.memory_space<semaphore_mem>> -> memref<1x!tpu.dma_semaphore, #tpu.memory_space<semaphore_mem>>
    %47 = tpu.memref_squeeze %46 : memref<1x!tpu.dma_semaphore, #tpu.memory_space<semaphore_mem>> -> memref<!tpu.dma_semaphore, #tpu.memory_space<semaphore_mem>>
    tpu.enqueue_dma source(%43 : memref<768xf32, #tpu.memory_space<any>>) target(%45 : memref<768xf32, #tpu.memory_space<vmem>>) target_semaphore(%47 : memref<!tpu.dma_semaphore, #tpu.memory_space<semaphore_mem>>)
    %c8_i32_26 = arith.constant 8 : i32
    %48 = arith.muli %arg0, %c8_i32_26 : i32
    %c4_i32 = arith.constant 4 : i32
    %49 = arith.addi %48, %c4_i32 : i32
    %50 = arith.index_cast %49 : i32 to index
    %51 = memref.load %arg1[%50] : memref<64xi32, #tpu.memory_space<smem>>
    %c0_i32_27 = arith.constant 0 : i32
    %c63_i32_28 = arith.constant 63 : i32
    %52 = arith.maxsi %c0_i32_27, %51 : i32
    %53 = arith.minsi %c63_i32_28, %52 : i32
    %c4_i32_29 = arith.constant 4 : i32
    %c4_i32_30 = arith.constant 4 : i32
    %c0_i32_31 = arith.constant 0 : i32
    %54 = tpu.memref_slice %arg2[%53, %c0_i32_31] : memref<64x768xf32, #tpu.memory_space<any>> -> memref<1x768xf32, #tpu.memory_space<any>>
    %55 = tpu.memref_squeeze %54 : memref<1x768xf32, #tpu.memory_space<any>> -> memref<768xf32, #tpu.memory_space<any>>
    %c0_i32_32 = arith.constant 0 : i32
    %56 = tpu.memref_slice %arg5[%c4_i32_29, %c0_i32_32] : memref<8x768xf32, #tpu.memory_space<vmem>> -> memref<1x768xf32, #tpu.memory_space<vmem>>
    %57 = tpu.memref_squeeze %56 : memref<1x768xf32, #tpu.memory_space<vmem>> -> memref<768xf32, #tpu.memory_space<vmem>>
    %58 = tpu.memref_slice %arg6[%c4_i32_30] : memref<8x!tpu.dma_semaphore, #tpu.memory_space<semaphore_mem>> -> memref<1x!tpu.dma_semaphore, #tpu.memory_space<semaphore_mem>>
    %59 = tpu.memref_squeeze %58 : memref<1x!tpu.dma_semaphore, #tpu.memory_space<semaphore_mem>> -> memref<!tpu.dma_semaphore, #tpu.memory_space<semaphore_mem>>
    tpu.enqueue_dma source(%55 : memref<768xf32, #tpu.memory_space<any>>) target(%57 : memref<768xf32, #tpu.memory_space<vmem>>) target_semaphore(%59 : memref<!tpu.dma_semaphore, #tpu.memory_space<semaphore_mem>>)
    %c8_i32_33 = arith.constant 8 : i32
    %60 = arith.muli %arg0, %c8_i32_33 : i32
    %c5_i32 = arith.constant 5 : i32
    %61 = arith.addi %60, %c5_i32 : i32
    %62 = arith.index_cast %61 : i32 to index
    %63 = memref.load %arg1[%62] : memref<64xi32, #tpu.memory_space<smem>>
    %c0_i32_34 = arith.constant 0 : i32
    %c63_i32_35 = arith.constant 63 : i32
    %64 = arith.maxsi %c0_i32_34, %63 : i32
    %65 = arith.minsi %c63_i32_35, %64 : i32
    %c5_i32_36 = arith.constant 5 : i32
    %c5_i32_37 = arith.constant 5 : i32
    %c0_i32_38 = arith.constant 0 : i32
    %66 = tpu.memref_slice %arg2[%65, %c0_i32_38] : memref<64x768xf32, #tpu.memory_space<any>> -> memref<1x768xf32, #tpu.memory_space<any>>
    %67 = tpu.memref_squeeze %66 : memref<1x768xf32, #tpu.memory_space<any>> -> memref<768xf32, #tpu.memory_space<any>>
    %c0_i32_39 = arith.constant 0 : i32
    %68 = tpu.memref_slice %arg5[%c5_i32_36, %c0_i32_39] : memref<8x768xf32, #tpu.memory_space<vmem>> -> memref<1x768xf32, #tpu.memory_space<vmem>>
    %69 = tpu.memref_squeeze %68 : memref<1x768xf32, #tpu.memory_space<vmem>> -> memref<768xf32, #tpu.memory_space<vmem>>
    %70 = tpu.memref_slice %arg6[%c5_i32_37] : memref<8x!tpu.dma_semaphore, #tpu.memory_space<semaphore_mem>> -> memref<1x!tpu.dma_semaphore, #tpu.memory_space<semaphore_mem>>
    %71 = tpu.memref_squeeze %70 : memref<1x!tpu.dma_semaphore, #tpu.memory_space<semaphore_mem>> -> memref<!tpu.dma_semaphore, #tpu.memory_space<semaphore_mem>>
    tpu.enqueue_dma source(%67 : memref<768xf32, #tpu.memory_space<any>>) target(%69 : memref<768xf32, #tpu.memory_space<vmem>>) target_semaphore(%71 : memref<!tpu.dma_semaphore, #tpu.memory_space<semaphore_mem>>)
    %c8_i32_40 = arith.constant 8 : i32
    %72 = arith.muli %arg0, %c8_i32_40 : i32
    %c6_i32 = arith.constant 6 : i32
    %73 = arith.addi %72, %c6_i32 : i32
    %74 = arith.index_cast %73 : i32 to index
    %75 = memref.load %arg1[%74] : memref<64xi32, #tpu.memory_space<smem>>
    %c0_i32_41 = arith.constant 0 : i32
    %c63_i32_42 = arith.constant 63 : i32
    %76 = arith.maxsi %c0_i32_41, %75 : i32
    %77 = arith.minsi %c63_i32_42, %76 : i32
    %c6_i32_43 = arith.constant 6 : i32
    %c6_i32_44 = arith.constant 6 : i32
    %c0_i32_45 = arith.constant 0 : i32
    %78 = tpu.memref_slice %arg2[%77, %c0_i32_45] : memref<64x768xf32, #tpu.memory_space<any>> -> memref<1x768xf32, #tpu.memory_space<any>>
    %79 = tpu.memref_squeeze %78 : memref<1x768xf32, #tpu.memory_space<any>> -> memref<768xf32, #tpu.memory_space<any>>
    %c0_i32_46 = arith.constant 0 : i32
    %80 = tpu.memref_slice %arg5[%c6_i32_43, %c0_i32_46] : memref<8x768xf32, #tpu.memory_space<vmem>> -> memref<1x768xf32, #tpu.memory_space<vmem>>
    %81 = tpu.memref_squeeze %80 : memref<1x768xf32, #tpu.memory_space<vmem>> -> memref<768xf32, #tpu.memory_space<vmem>>
    %82 = tpu.memref_slice %arg6[%c6_i32_44] : memref<8x!tpu.dma_semaphore, #tpu.memory_space<semaphore_mem>> -> memref<1x!tpu.dma_semaphore, #tpu.memory_space<semaphore_mem>>
    %83 = tpu.memref_squeeze %82 : memref<1x!tpu.dma_semaphore, #tpu.memory_space<semaphore_mem>> -> memref<!tpu.dma_semaphore, #tpu.memory_space<semaphore_mem>>
    tpu.enqueue_dma source(%79 : memref<768xf32, #tpu.memory_space<any>>) target(%81 : memref<768xf32, #tpu.memory_space<vmem>>) target_semaphore(%83 : memref<!tpu.dma_semaphore, #tpu.memory_space<semaphore_mem>>)
    %c8_i32_47 = arith.constant 8 : i32
    %84 = arith.muli %arg0, %c8_i32_47 : i32
    %c7_i32 = arith.constant 7 : i32
    %85 = arith.addi %84, %c7_i32 : i32
    %86 = arith.index_cast %85 : i32 to index
    %87 = memref.load %arg1[%86] : memref<64xi32, #tpu.memory_space<smem>>
    %c0_i32_48 = arith.constant 0 : i32
    %c63_i32_49 = arith.constant 63 : i32
    %88 = arith.maxsi %c0_i32_48, %87 : i32
    %89 = arith.minsi %c63_i32_49, %88 : i32
    %c7_i32_50 = arith.constant 7 : i32
    %c7_i32_51 = arith.constant 7 : i32
    %c0_i32_52 = arith.constant 0 : i32
    %90 = tpu.memref_slice %arg2[%89, %c0_i32_52] : memref<64x768xf32, #tpu.memory_space<any>> -> memref<1x768xf32, #tpu.memory_space<any>>
    %91 = tpu.memref_squeeze %90 : memref<1x768xf32, #tpu.memory_space<any>> -> memref<768xf32, #tpu.memory_space<any>>
    %c0_i32_53 = arith.constant 0 : i32
    %92 = tpu.memref_slice %arg5[%c7_i32_50, %c0_i32_53] : memref<8x768xf32, #tpu.memory_space<vmem>> -> memref<1x768xf32, #tpu.memory_space<vmem>>
    %93 = tpu.memref_squeeze %92 : memref<1x768xf32, #tpu.memory_space<vmem>> -> memref<768xf32, #tpu.memory_space<vmem>>
    %94 = tpu.memref_slice %arg6[%c7_i32_51] : memref<8x!tpu.dma_semaphore, #tpu.memory_space<semaphore_mem>> -> memref<1x!tpu.dma_semaphore, #tpu.memory_space<semaphore_mem>>
    %95 = tpu.memref_squeeze %94 : memref<1x!tpu.dma_semaphore, #tpu.memory_space<semaphore_mem>> -> memref<!tpu.dma_semaphore, #tpu.memory_space<semaphore_mem>>
    tpu.enqueue_dma source(%91 : memref<768xf32, #tpu.memory_space<any>>) target(%93 : memref<768xf32, #tpu.memory_space<vmem>>) target_semaphore(%95 : memref<!tpu.dma_semaphore, #tpu.memory_space<semaphore_mem>>)
    %c0_i32_54 = arith.constant 0 : i32
    %c0_i32_55 = arith.constant 0 : i32
    %c0_i32_56 = arith.constant 0 : i32
    %c0_i32_57 = arith.constant 0 : i32
    %96 = tpu.memref_slice %arg2[%c0_i32_54, %c0_i32_57] : memref<64x768xf32, #tpu.memory_space<any>> -> memref<1x768xf32, #tpu.memory_space<any>>
    %97 = tpu.memref_squeeze %96 : memref<1x768xf32, #tpu.memory_space<any>> -> memref<768xf32, #tpu.memory_space<any>>
    %c0_i32_58 = arith.constant 0 : i32
    %98 = tpu.memref_slice %arg5[%c0_i32_55, %c0_i32_58] : memref<8x768xf32, #tpu.memory_space<vmem>> -> memref<1x768xf32, #tpu.memory_space<vmem>>
    %99 = tpu.memref_squeeze %98 : memref<1x768xf32, #tpu.memory_space<vmem>> -> memref<768xf32, #tpu.memory_space<vmem>>
    %100 = tpu.memref_slice %arg6[%c0_i32_56] : memref<8x!tpu.dma_semaphore, #tpu.memory_space<semaphore_mem>> -> memref<1x!tpu.dma_semaphore, #tpu.memory_space<semaphore_mem>>
    %101 = tpu.memref_squeeze %100 : memref<1x!tpu.dma_semaphore, #tpu.memory_space<semaphore_mem>> -> memref<!tpu.dma_semaphore, #tpu.memory_space<semaphore_mem>>
    tpu.wait_dma2 semaphore(%101 : memref<!tpu.dma_semaphore, #tpu.memory_space<semaphore_mem>>) src(%97 : memref<768xf32, #tpu.memory_space<any>>) dst(%99 : memref<768xf32, #tpu.memory_space<vmem>>)
    %c0_i32_59 = arith.constant 0 : i32
    %c1_i32_60 = arith.constant 1 : i32
    %c1_i32_61 = arith.constant 1 : i32
    %c0_i32_62 = arith.constant 0 : i32
    %102 = tpu.memref_slice %arg2[%c0_i32_59, %c0_i32_62] : memref<64x768xf32, #tpu.memory_space<any>> -> memref<1x768xf32, #tpu.memory_space<any>>
    %103 = tpu.memref_squeeze %102 : memref<1x768xf32, #tpu.memory_space<any>> -> memref<768xf32, #tpu.memory_space<any>>
    %c0_i32_63 = arith.constant 0 : i32
    %104 = tpu.memref_slice %arg5[%c1_i32_60, %c0_i32_63] : memref<8x768xf32, #tpu.memory_space<vmem>> -> memref<1x768xf32, #tpu.memory_space<vmem>>
    %105 = tpu.memref_squeeze %104 : memref<1x768xf32, #tpu.memory_space<vmem>> -> memref<768xf32, #tpu.memory_space<vmem>>
    %106 = tpu.memref_slice %arg6[%c1_i32_61] : memref<8x!tpu.dma_semaphore, #tpu.memory_space<semaphore_mem>> -> memref<1x!tpu.dma_semaphore, #tpu.memory_space<semaphore_mem>>
    %107 = tpu.memref_squeeze %106 : memref<1x!tpu.dma_semaphore, #tpu.memory_space<semaphore_mem>> -> memref<!tpu.dma_semaphore, #tpu.memory_space<semaphore_mem>>
    tpu.wait_dma2 semaphore(%107 : memref<!tpu.dma_semaphore, #tpu.memory_space<semaphore_mem>>) src(%103 : memref<768xf32, #tpu.memory_space<any>>) dst(%105 : memref<768xf32, #tpu.memory_space<vmem>>)
    %c0_i32_64 = arith.constant 0 : i32
    %c2_i32_65 = arith.constant 2 : i32
    %c2_i32_66 = arith.constant 2 : i32
    %c0_i32_67 = arith.constant 0 : i32
    %108 = tpu.memref_slice %arg2[%c0_i32_64, %c0_i32_67] : memref<64x768xf32, #tpu.memory_space<any>> -> memref<1x768xf32, #tpu.memory_space<any>>
    %109 = tpu.memref_squeeze %108 : memref<1x768xf32, #tpu.memory_space<any>> -> memref<768xf32, #tpu.memory_space<any>>
    %c0_i32_68 = arith.constant 0 : i32
    %110 = tpu.memref_slice %arg5[%c2_i32_65, %c0_i32_68] : memref<8x768xf32, #tpu.memory_space<vmem>> -> memref<1x768xf32, #tpu.memory_space<vmem>>
    %111 = tpu.memref_squeeze %110 : memref<1x768xf32, #tpu.memory_space<vmem>> -> memref<768xf32, #tpu.memory_space<vmem>>
    %112 = tpu.memref_slice %arg6[%c2_i32_66] : memref<8x!tpu.dma_semaphore, #tpu.memory_space<semaphore_mem>> -> memref<1x!tpu.dma_semaphore, #tpu.memory_space<semaphore_mem>>
    %113 = tpu.memref_squeeze %112 : memref<1x!tpu.dma_semaphore, #tpu.memory_space<semaphore_mem>> -> memref<!tpu.dma_semaphore, #tpu.memory_space<semaphore_mem>>
    tpu.wait_dma2 semaphore(%113 : memref<!tpu.dma_semaphore, #tpu.memory_space<semaphore_mem>>) src(%109 : memref<768xf32, #tpu.memory_space<any>>) dst(%111 : memref<768xf32, #tpu.memory_space<vmem>>)
    %c0_i32_69 = arith.constant 0 : i32
    %c3_i32_70 = arith.constant 3 : i32
    %c3_i32_71 = arith.constant 3 : i32
    %c0_i32_72 = arith.constant 0 : i32
    %114 = tpu.memref_slice %arg2[%c0_i32_69, %c0_i32_72] : memref<64x768xf32, #tpu.memory_space<any>> -> memref<1x768xf32, #tpu.memory_space<any>>
    %115 = tpu.memref_squeeze %114 : memref<1x768xf32, #tpu.memory_space<any>> -> memref<768xf32, #tpu.memory_space<any>>
    %c0_i32_73 = arith.constant 0 : i32
    %116 = tpu.memref_slice %arg5[%c3_i32_70, %c0_i32_73] : memref<8x768xf32, #tpu.memory_space<vmem>> -> memref<1x768xf32, #tpu.memory_space<vmem>>
    %117 = tpu.memref_squeeze %116 : memref<1x768xf32, #tpu.memory_space<vmem>> -> memref<768xf32, #tpu.memory_space<vmem>>
    %118 = tpu.memref_slice %arg6[%c3_i32_71] : memref<8x!tpu.dma_semaphore, #tpu.memory_space<semaphore_mem>> -> memref<1x!tpu.dma_semaphore, #tpu.memory_space<semaphore_mem>>
    %119 = tpu.memref_squeeze %118 : memref<1x!tpu.dma_semaphore, #tpu.memory_space<semaphore_mem>> -> memref<!tpu.dma_semaphore, #tpu.memory_space<semaphore_mem>>
    tpu.wait_dma2 semaphore(%119 : memref<!tpu.dma_semaphore, #tpu.memory_space<semaphore_mem>>) src(%115 : memref<768xf32, #tpu.memory_space<any>>) dst(%117 : memref<768xf32, #tpu.memory_space<vmem>>)
    %c0_i32_74 = arith.constant 0 : i32
    %c4_i32_75 = arith.constant 4 : i32
    %c4_i32_76 = arith.constant 4 : i32
    %c0_i32_77 = arith.constant 0 : i32
    %120 = tpu.memref_slice %arg2[%c0_i32_74, %c0_i32_77] : memref<64x768xf32, #tpu.memory_space<any>> -> memref<1x768xf32, #tpu.memory_space<any>>
    %121 = tpu.memref_squeeze %120 : memref<1x768xf32, #tpu.memory_space<any>> -> memref<768xf32, #tpu.memory_space<any>>
    %c0_i32_78 = arith.constant 0 : i32
    %122 = tpu.memref_slice %arg5[%c4_i32_75, %c0_i32_78] : memref<8x768xf32, #tpu.memory_space<vmem>> -> memref<1x768xf32, #tpu.memory_space<vmem>>
    %123 = tpu.memref_squeeze %122 : memref<1x768xf32, #tpu.memory_space<vmem>> -> memref<768xf32, #tpu.memory_space<vmem>>
    %124 = tpu.memref_slice %arg6[%c4_i32_76] : memref<8x!tpu.dma_semaphore, #tpu.memory_space<semaphore_mem>> -> memref<1x!tpu.dma_semaphore, #tpu.memory_space<semaphore_mem>>
    %125 = tpu.memref_squeeze %124 : memref<1x!tpu.dma_semaphore, #tpu.memory_space<semaphore_mem>> -> memref<!tpu.dma_semaphore, #tpu.memory_space<semaphore_mem>>
    tpu.wait_dma2 semaphore(%125 : memref<!tpu.dma_semaphore, #tpu.memory_space<semaphore_mem>>) src(%121 : memref<768xf32, #tpu.memory_space<any>>) dst(%123 : memref<768xf32, #tpu.memory_space<vmem>>)
    %c0_i32_79 = arith.constant 0 : i32
    %c5_i32_80 = arith.constant 5 : i32
    %c5_i32_81 = arith.constant 5 : i32
    %c0_i32_82 = arith.constant 0 : i32
    %126 = tpu.memref_slice %arg2[%c0_i32_79, %c0_i32_82] : memref<64x768xf32, #tpu.memory_space<any>> -> memref<1x768xf32, #tpu.memory_space<any>>
    %127 = tpu.memref_squeeze %126 : memref<1x768xf32, #tpu.memory_space<any>> -> memref<768xf32, #tpu.memory_space<any>>
    %c0_i32_83 = arith.constant 0 : i32
    %128 = tpu.memref_slice %arg5[%c5_i32_80, %c0_i32_83] : memref<8x768xf32, #tpu.memory_space<vmem>> -> memref<1x768xf32, #tpu.memory_space<vmem>>
    %129 = tpu.memref_squeeze %128 : memref<1x768xf32, #tpu.memory_space<vmem>> -> memref<768xf32, #tpu.memory_space<vmem>>
    %130 = tpu.memref_slice %arg6[%c5_i32_81] : memref<8x!tpu.dma_semaphore, #tpu.memory_space<semaphore_mem>> -> memref<1x!tpu.dma_semaphore, #tpu.memory_space<semaphore_mem>>
    %131 = tpu.memref_squeeze %130 : memref<1x!tpu.dma_semaphore, #tpu.memory_space<semaphore_mem>> -> memref<!tpu.dma_semaphore, #tpu.memory_space<semaphore_mem>>
    tpu.wait_dma2 semaphore(%131 : memref<!tpu.dma_semaphore, #tpu.memory_space<semaphore_mem>>) src(%127 : memref<768xf32, #tpu.memory_space<any>>) dst(%129 : memref<768xf32, #tpu.memory_space<vmem>>)
    %c0_i32_84 = arith.constant 0 : i32
    %c6_i32_85 = arith.constant 6 : i32
    %c6_i32_86 = arith.constant 6 : i32
    %c0_i32_87 = arith.constant 0 : i32
    %132 = tpu.memref_slice %arg2[%c0_i32_84, %c0_i32_87] : memref<64x768xf32, #tpu.memory_space<any>> -> memref<1x768xf32, #tpu.memory_space<any>>
    %133 = tpu.memref_squeeze %132 : memref<1x768xf32, #tpu.memory_space<any>> -> memref<768xf32, #tpu.memory_space<any>>
    %c0_i32_88 = arith.constant 0 : i32
    %134 = tpu.memref_slice %arg5[%c6_i32_85, %c0_i32_88] : memref<8x768xf32, #tpu.memory_space<vmem>> -> memref<1x768xf32, #tpu.memory_space<vmem>>
    %135 = tpu.memref_squeeze %134 : memref<1x768xf32, #tpu.memory_space<vmem>> -> memref<768xf32, #tpu.memory_space<vmem>>
    %136 = tpu.memref_slice %arg6[%c6_i32_86] : memref<8x!tpu.dma_semaphore, #tpu.memory_space<semaphore_mem>> -> memref<1x!tpu.dma_semaphore, #tpu.memory_space<semaphore_mem>>
    %137 = tpu.memref_squeeze %136 : memref<1x!tpu.dma_semaphore, #tpu.memory_space<semaphore_mem>> -> memref<!tpu.dma_semaphore, #tpu.memory_space<semaphore_mem>>
    tpu.wait_dma2 semaphore(%137 : memref<!tpu.dma_semaphore, #tpu.memory_space<semaphore_mem>>) src(%133 : memref<768xf32, #tpu.memory_space<any>>) dst(%135 : memref<768xf32, #tpu.memory_space<vmem>>)
    %c0_i32_89 = arith.constant 0 : i32
    %c7_i32_90 = arith.constant 7 : i32
    %c7_i32_91 = arith.constant 7 : i32
    %c0_i32_92 = arith.constant 0 : i32
    %138 = tpu.memref_slice %arg2[%c0_i32_89, %c0_i32_92] : memref<64x768xf32, #tpu.memory_space<any>> -> memref<1x768xf32, #tpu.memory_space<any>>
    %139 = tpu.memref_squeeze %138 : memref<1x768xf32, #tpu.memory_space<any>> -> memref<768xf32, #tpu.memory_space<any>>
    %c0_i32_93 = arith.constant 0 : i32
    %140 = tpu.memref_slice %arg5[%c7_i32_90, %c0_i32_93] : memref<8x768xf32, #tpu.memory_space<vmem>> -> memref<1x768xf32, #tpu.memory_space<vmem>>
    %141 = tpu.memref_squeeze %140 : memref<1x768xf32, #tpu.memory_space<vmem>> -> memref<768xf32, #tpu.memory_space<vmem>>
    %142 = tpu.memref_slice %arg6[%c7_i32_91] : memref<8x!tpu.dma_semaphore, #tpu.memory_space<semaphore_mem>> -> memref<1x!tpu.dma_semaphore, #tpu.memory_space<semaphore_mem>>
    %143 = tpu.memref_squeeze %142 : memref<1x!tpu.dma_semaphore, #tpu.memory_space<semaphore_mem>> -> memref<!tpu.dma_semaphore, #tpu.memory_space<semaphore_mem>>
    tpu.wait_dma2 semaphore(%143 : memref<!tpu.dma_semaphore, #tpu.memory_space<semaphore_mem>>) src(%139 : memref<768xf32, #tpu.memory_space<any>>) dst(%141 : memref<768xf32, #tpu.memory_space<vmem>>)
    %c0 = arith.constant 0 : index
    %c0_94 = arith.constant 0 : index
    %144 = vector.load %arg5[%c0, %c0_94] : memref<8x768xf32, #tpu.memory_space<vmem>>, vector<8x768xf32>
    %145 = vector.extract_strided_slice %144 {offsets = [0, 0], sizes = [8, 384], strides = [1, 1]} : vector<8x768xf32> to vector<8x384xf32>
    %146 = vector.shape_cast %145 : vector<8x384xf32> to vector<1x8x384xf32>
    %c0_95 = arith.constant 0 : index
    %c0_96 = arith.constant 0 : index
    %c0_97 = arith.constant 0 : index
    %147 = vector.load %arg3[%c0_95, %c0_96, %c0_97] : memref<1x8x384xf32, #tpu.memory_space<vmem>>, vector<1x8x384xf32>
    tpu.vector_store %arg3[%c0_95, %c0_96, %c0_97], %146 {strides = array<i32>} : memref<1x8x384xf32, #tpu.memory_space<vmem>>, vector<1x8x384xf32>,
    %148 = vector.extract_strided_slice %144 {offsets = [0, 384], sizes = [8, 384], strides = [1, 1]} : vector<8x768xf32> to vector<8x384xf32>
    %149 = vector.shape_cast %148 : vector<8x384xf32> to vector<1x8x384xf32>
    %c0_98 = arith.constant 0 : index
    %c0_99 = arith.constant 0 : index
    %c0_100 = arith.constant 0 : index
    %150 = vector.load %arg4[%c0_98, %c0_99, %c0_100] : memref<1x8x384xf32, #tpu.memory_space<vmem>>, vector<1x8x384xf32>
    tpu.vector_store %arg4[%c0_98, %c0_99, %c0_100], %149 {strides = array<i32>} : memref<1x8x384xf32, #tpu.memory_space<vmem>>, vector<1x8x384xf32>,
    return
  }
  func.func @transform_1(%arg0: i32, %arg1: memref<64xi32, #tpu.memory_space<smem>>) -> (i32, i32, i32) {
    %c0_i32 = arith.constant 0 : i32
    %c0_i32_0 = arith.constant 0 : i32
    %c0_i32_1 = arith.constant 0 : i32
    return %arg0, %c0_i32, %c0_i32_0 : i32, i32, i32
  }
  func.func @transform_2(%arg0: i32, %arg1: memref<64xi32, #tpu.memory_space<smem>>) -> (i32, i32, i32) {
    %c0_i32 = arith.constant 0 : i32
    %c0_i32_0 = arith.constant 0 : i32
    %c0_i32_1 = arith.constant 0 : i32
    return %arg0, %c0_i32, %c0_i32_0 : i32, i32, i32
  }
}

</mosaic_0001>

<bundles_post_ra>
// kernel: tpu_custom_call.1
= control target key start
LH: loop header
LB: loop body
LE: loop exit
PB: predicated region body
PF: predicated region fallthrough
CT: control target
= control target key end

     0   :  { %s1257_s0 = inlined_call_operand.hbm [shape: s32[64], index: 0, kind: input, shape index: {}]   ;;  %s1258_s1 = inlined_call_operand.hbm [shape: f32[64,768], index: 1, kind: input, shape index: {}]   ;;  %s1259_s2 = inlined_call_operand.hbm [shape: f32[8,8,384], index: 2, kind: output, shape index: {0}]   ;;  %s1260_s3 = inlined_call_operand.hbm [shape: f32[8,8,384], index: 3, kind: output, shape index: {1}]  }
   0x1   :  { %1271 = sst [smem:[#allocation34_spill]] %s1260_s3  ;;  %s585_s14 = scalar_lea.hbm %s1257_s0, 16 }
   0x2   :  { %p586_p0 = scmp.ne.s32.totalorder %s1257_s0, %s585_s14  ;;  %p589_p1 = scmp.lt.u32.totalorder %s585_s14, %s1257_s0 }
   0x4   :  { %p591_p2 = pnand %p589_p1, %p586_p0 }
   0x6   :  { %594 = shalt.err (!%p591_p2)  }
   0x7   :  { %s893_s19 = smov [#allocation5]  }
   0x8   :  { %10 = dma.hbm_to_smem %s1257_s0, 16, %s893_s19, [#allocation4] }
   0x9   :  { %855 = dma.done.wait [#allocation4], 16 }
   0xa   :  { %856 = vsyncadd [#allocation4], 4294967280 }
   0xb   :  { %12 = sfence }
   0xc   :  { %13 = vsyncpa [#allocation7], 0 }
   0xd   :  { %15 = vsyncpa [#allocation7 + $0x1], 0 }
   0xe   :  { %16 = vsyncpa [#allocation9], 0 }
   0xf   :  { %18 = vsyncpa [#allocation9 + $0x1], 0  ;;  %s938_s22 = smov 0   ;;  %s940_s23 = smov 0  }
  0x10   :  { %s942_s24 = smov 0  }
  0x11 LB: > { %1272 = sst [smem:[#allocation29_spill]] %s883_s22  ;;  %s454_s0 = sadd.s32 4294967295, %s891_s24   ;;  %s891_s24 = sphi %s942_s24, %s1293_s24   ;;  %s887_s23 = sphi %s940_s23, %s1295_s23   ;;  %s883_s22 = sphi %s938_s22, %s1294_s22  }
  0x12   : > { %1273 = sst [smem:[#allocation30_spill]] %s887_s23  ;;  %s955_s25 = sadd.s32 1, %s891_s24  }
  0x13   : > { %1274 = sst [smem:[#allocation31_spill]] %s955_s25  ;;  %s27_s26 = ssub.s32 %s891_s24, %s955_s25 }
  0x14   : > { %s30_s27 = sadd.s32 1, %s887_s23  ;;  %p28_p3 = scmp.eq.s32.totalorder %s27_s26, 0 }
  0x15   : > { %p455_p4 = scmp.ne.s32.totalorder %s27_s26, 0  ;;  %p34_p5 = scmp.eq.s32.totalorder %s891_s24, 7 }
  0x16   : > { %p39_p6 = scmp.ne.s32.totalorder %s887_s23, %s883_s22  ;;  %p40_p8 = scmp.eq.s32.totalorder %s454_s0, 7 }
  0x17   : > { %s964_s28 = scalar_select %p28_p3, %s887_s23, %s30_s27  }
  0x18   : > { %p966_p7 = por %p455_p4, %p34_p5  ;;  %p970_p9 = por %p40_p8, %p39_p6 }
  0x19   : > { %1275 = sst [smem:[#allocation32_spill]] %s964_s28  ;;  %p457_p10 = scmp.ge.s32.totalorder %s891_s24, 8 }
  0x1a   : > { %s1277_s30 = scalar_select %p970_p9, 1, 0 }
  0x1b   : > { %68 = sbr.rel (%p457_p10) target bundleno = 327 (0x147), region = 12  ;;  %s976_s4 = sand.u32 (!%p457_p10), 1, %s887_s23  }
  0x1c   : > { %1278 = sst [smem:[#allocation33_spill]] %s1277_s30  ;;  %s979_s5 = sshll.u32 (!%p457_p10), %s891_s24, 3 }
  0x1d   : > { %s84_s7 = sld [smem:[#allocation5 + %s979_s5]] (!%p457_p10)  ;;  %s894_s8 = smov (!%p457_p10), [#allocation2]  }
  0x1e   : > { %s96_s9 = sshll.u32 (!%p457_p10), %s894_s8, 4  ;;  %s100_s10 = sadd.s32 (!%p457_p10), 1, %s979_s5  ;;  %s987_s9 = int_to_ptr.vmem [resolvable:$true] %s96_s9 }
  0x1f   : > { %s984_s11 = sld [smem:[#allocation5 + %s100_s10]] (!%p457_p10)  ;;  %s895_s12 = smov (!%p457_p10), [#allocation2 + $0x1]  }
  0x20   : > { %s115_s13 = sshll.u32 (!%p457_p10), %s895_s12, 4  ;;  %s119_s14 = sadd.s32 (!%p457_p10), 2, %s979_s5  ;;  %s992_s13 = int_to_ptr.vmem [resolvable:$true] %s115_s13 }
  0x21   : > { %s989_s15 = sld [smem:[#allocation5 + %s119_s14]] (!%p457_p10)  ;;  %s1006_s14 = scalar_lea.hbm (!%p457_p10), %s1258_s1, 6144 }
  0x23   : > { %p85_p11 = scmp.gt.s32.totalorder %s84_s7, 0  ;;  %p459_p12 = scmp.lt.s32.totalorder %s84_s7, 63 }
  0x25   : > { %s1297_s7 = smov (!%p85_p11, %s84_s7), 0  ;;  %p102_p13 = scmp.gt.s32.totalorder %s984_s11, 0 }
  0x26   : > { %s1299_s7 = smov (!%p459_p12, %s1297_s7), 63 }
  0x27   : > { %s89_s16 = sshrl.u32 %s1299_s7, 3  ;;  %s90_s17 = sand.u32 7, %s1299_s7  }
  0x28   : > { %s91_s18 = smul.u32 48, %s89_s16 }
  0x29   : > { %s996_s19 = scalar_select %p102_p13, %s984_s11, 0 }
  0x2a   : > { %s92_s20 = sadd.s32 %s91_s18, %s90_s17 }
  0x2b   : > { %s464_s21 = sshll.u32 %s92_s20, 4 }
  0x2c   : > { %s94_s27 = scalar_lea.hbm %s1258_s1, %s464_s21 }
  0x2d   : > { %s595_s8 = scalar_lea.hbm %s94_s27, 96  ;;  %p598_p4 = scmp.lt.u32.totalorder %s94_s27, %s1258_s1 }
  0x2e   : > { %p596_p3 = scmp.ne.s32.totalorder %s94_s27, %s595_s8  ;;  %p599_p5 = scmp.lt.u32.totalorder %s1006_s14, %s595_s8 }
  0x2f   : > { %p601_p8 = scmp.lt.u32.totalorder %s595_s8, %s94_s27 }
  0x30   : > { %p600_p6 = por %p599_p5, %p598_p4 }
  0x32   : > { %p602_p10 = por %p601_p8, %p600_p6 }
  0x34   : > { %p603_p11 = pnand %p602_p10, %p596_p3 }
  0x36   : > { %606 = shalt.err (!%p603_p11)  }
  0x37   : > { %s607_s17 = scalar_lea.vmem %s987_s9, 96  ;;  %s1015_s18 = scalar_lea.vmem %s987_s9, 768 }
  0x38   : > { %p608_p12 = scmp.ne.s32.totalorder %s987_s9, %s607_s17  ;;  %p612_p13 = scmp.lt.s32.totalorder %s987_s9, %s987_s9 }
  0x39   : > { %p613_p2 = scmp.lt.s32.totalorder %s1015_s18, %s607_s17 }
  0x3b   : > { %p614_p1 = por %p613_p2, %p612_p13 }
  0x3d   : > { %p615_p0 = pnand %p614_p1, %p608_p12 }
  0x3f   : > { %618 = shalt.err (!%p615_p0)  }
  0x40   : > { %s1264_s20 = smov 128   ;;  %s1266_s21 = smov 1  }
  0x41   : > { %99 = dma.hbm_to_vmem [thread:$0]  %s94_s27, 96, %s987_s9, [#allocation3], %s1264_s20, %s1264_s20, %s1266_s21 }
  0x42   : > { %p1279_p3 = scmp.lt.s32.totalorder %s984_s11, 63  ;;  %p1280_p4 = scmp.gt.s32.totalorder %s989_s15, 0 }
  0x43   : > { %s898_s12 = smov [#allocation2 + $0x2]   ;;  %p1281_p0 = scmp.lt.s32.totalorder %s989_s15, 63 }
  0x44   : > { %s1301_s19 = smov (!%p1279_p3, %s996_s19), 63  ;;  %s1030_s7 = sshll.u32 %s898_s12, 4  ;;  %s135_s7 = int_to_ptr.vmem [resolvable:$true] %s1030_s7 }
  0x45   : > { %s122_s0 = scalar_select %p1280_p4, %s989_s15, 0 }
  0x46   : > { %s106_s26 = sshrl.u32 %s1301_s19, 3  ;;  %s107_s8 = sand.u32 7, %s1301_s19  }
  0x47   : > { %s108_s10 = smul.u32 48, %s106_s26  ;;  %s1303_s0 = smov (!%p1281_p0, %s122_s0), 63 }
  0x48   : > { %s138_s17 = sadd.s32 3, %s979_s5  ;;  %s125_s28 = sshrl.u32 %s1303_s0, 3 }
  0x49   : > { %s109_s16 = sadd.s32 %s108_s10, %s107_s8  ;;  %s126_s27 = sand.u32 7, %s1303_s0  }
  0x4a   : > { %s470_s6 = sshll.u32 %s109_s16, 4 }
  0x4b   : > { %s111_s11 = scalar_lea.hbm %s1258_s1, %s470_s6 }
  0x4c   : > { %s619_s20 = scalar_lea.hbm %s111_s11, 96  ;;  %p622_p2 = scmp.lt.u32.totalorder %s111_s11, %s1258_s1 }
  0x4d   : > { %p620_p1 = scmp.ne.s32.totalorder %s111_s11, %s619_s20  ;;  %p623_p5 = scmp.lt.u32.totalorder %s1006_s14, %s619_s20 }
  0x4e   : > { %p625_p8 = scmp.lt.u32.totalorder %s619_s20, %s111_s11 }
  0x4f   : > { %p624_p6 = por %p623_p5, %p622_p2 }
  0x51   : > { %p626_p10 = por %p625_p8, %p624_p6 }
  0x53   : > { %p627_p11 = pnand %p626_p10, %p620_p1 }
  0x55   : > { %630 = shalt.err (!%p627_p11)  }
  0x56   : > { %s631_s23 = scalar_lea.vmem %s992_s13, 96  ;;  %p636_p13 = scmp.lt.s32.totalorder %s992_s13, %s987_s9 }
  0x57   : > { %p632_p12 = scmp.ne.s32.totalorder %s992_s13, %s631_s23  ;;  %p637_p3 = scmp.lt.s32.totalorder %s1015_s18, %s631_s23 }
  0x59   : > { %p638_p4 = por %p637_p3, %p636_p13 }
  0x5b   : > { %p639_p0 = pnand %p638_p4, %p632_p12 }
  0x5d   : > { %642 = shalt.err (!%p639_p0)  }
  0x5e   : > { %s1282_s25 = smov 1   ;;  %s1283_s30 = smov 128  }
  0x5f   : > { %118 = dma.hbm_to_vmem [thread:$0]  %s111_s11, 96, %s992_s13, [#allocation3 + $0x1], %s1283_s30, %s1283_s30, %s1282_s25 }
  0x60   : > { %s127_s6 = smul.u32 48, %s125_s28  ;;  %s1051_s15 = sld [smem:[#allocation5 + %s138_s17]] }
  0x61   : > { %s157_s19 = sadd.s32 4, %s979_s5  ;;  %s899_s0 = smov [#allocation2 + $0x3]  }
  0x62   : > { %s128_s20 = sadd.s32 %s127_s6, %s126_s27  ;;  %s153_s26 = sshll.u32 %s899_s0, 4  ;;  %s1073_s26 = int_to_ptr.vmem [resolvable:$true] %s153_s26 }
  0x63   : > { %s476_s21 = sshll.u32 %s128_s20, 4  ;;  %s1058_s16 = sld [smem:[#allocation5 + %s157_s19]] }
  0x64   : > { %s130_s12 = scalar_lea.hbm %s1258_s1, %s476_s21 }
  0x65   : > { %s643_s23 = scalar_lea.hbm %s130_s12, 96  ;;  %p646_p2 = scmp.lt.u32.totalorder %s130_s12, %s1258_s1 }
  0x66   : > { %p644_p1 = scmp.ne.s32.totalorder %s130_s12, %s643_s23  ;;  %p647_p5 = scmp.lt.u32.totalorder %s1006_s14, %s643_s23 }
  0x67   : > { %p649_p8 = scmp.lt.u32.totalorder %s643_s23, %s130_s12 }
  0x68   : > { %p648_p6 = por %p647_p5, %p646_p2 }
  0x6a   : > { %p650_p10 = por %p649_p8, %p648_p6 }
  0x6c   : > { %p651_p11 = pnand %p650_p10, %p644_p1 }
  0x6e   : > { %654 = shalt.err (!%p651_p11)  }
  0x6f   : > { %s655_s28 = scalar_lea.vmem %s135_s7, 96  ;;  %p660_p13 = scmp.lt.s32.totalorder %s135_s7, %s987_s9 }
  0x70   : > { %p656_p12 = scmp.ne.s32.totalorder %s135_s7, %s655_s28  ;;  %p661_p3 = scmp.lt.s32.totalorder %s1015_s18, %s655_s28 }
  0x72   : > { %p662_p4 = por %p661_p3, %p660_p13 }
  0x74   : > { %p663_p0 = pnand %p662_p4, %p656_p12 }
  0x76   : > { %666 = shalt.err (!%p663_p0)  }
  0x77   : > { %137 = dma.hbm_to_vmem [thread:$0]  %s130_s12, 96, %s135_s7, [#allocation3 + $0x2], %s1283_s30, %s1283_s30, %s1282_s25 }
  0x78   : > { %p140_p1 = scmp.gt.s32.totalorder %s1051_s15, 0  ;;  %p477_p2 = scmp.lt.s32.totalorder %s1051_s15, 63 }
  0x79   : > { %s176_s3 = sadd.s32 5, %s979_s5  ;;  %p159_p5 = scmp.gt.s32.totalorder %s1058_s16, 0 }
  0x7a   : > { %s1305_s15 = smov (!%p140_p1, %s1051_s15), 0  ;;  %s1075_s22 = sld [smem:[#allocation5 + %s176_s3]] }
  0x7b   : > { %s1307_s15 = smov (!%p477_p2, %s1305_s15), 63  ;;  %s900_s13 = smov [#allocation2 + $0x4]  }
  0x7c   : > { %s1078_s17 = sshll.u32 %s900_s13, 4  ;;  %s144_s11 = sshrl.u32 %s1307_s15, 3  ;;  %s173_s17 = int_to_ptr.vmem [resolvable:$true] %s1078_s17 }
  0x7d   : > { %s145_s27 = sand.u32 7, %s1307_s15   ;;  %s146_s6 = smul.u32 48, %s144_s11 }
  0x7e   : > { %s160_s7 = scalar_select %p159_p5, %s1058_s16, 0 }
  0x7f   : > { %s147_s19 = sadd.s32 %s146_s6, %s145_s27 }
  0x80   : > { %s482_s20 = sshll.u32 %s147_s19, 4 }
  0x81   : > { %s149_s8 = scalar_lea.hbm %s1258_s1, %s482_s20 }
  0x82   : > { %s667_s10 = scalar_lea.hbm %s149_s8, 96  ;;  %p670_p12 = scmp.lt.u32.totalorder %s149_s8, %s1258_s1 }
  0x83   : > { %p668_p11 = scmp.ne.s32.totalorder %s149_s8, %s667_s10  ;;  %p671_p13 = scmp.lt.u32.totalorder %s1006_s14, %s667_s10 }
  0x84   : > { %p673_p4 = scmp.lt.u32.totalorder %s667_s10, %s149_s8 }
  0x85   : > { %p672_p3 = por %p671_p13, %p670_p12 }
  0x87   : > { %p674_p0 = por %p673_p4, %p672_p3 }
  0x89   : > { %p675_p1 = pnand %p674_p0, %p668_p11 }
  0x8b   : > { %678 = shalt.err (!%p675_p1)  }
  0x8c   : > { %s679_s15 = scalar_lea.vmem %s1073_s26, 96  ;;  %p684_p5 = scmp.lt.s32.totalorder %s1073_s26, %s987_s9 }
  0x8d   : > { %p680_p2 = scmp.ne.s32.totalorder %s1073_s26, %s679_s15  ;;  %p685_p10 = scmp.lt.s32.totalorder %s1015_s18, %s679_s15 }
  0x8f   : > { %p686_p8 = por %p685_p10, %p684_p5 }
  0x91   : > { %p687_p6 = pnand %p686_p8, %p680_p2 }
  0x93   : > { %690 = shalt.err (!%p687_p6)  }
  0x94   : > { %156 = dma.hbm_to_vmem [thread:$0]  %s149_s8, 96, %s1073_s26, [#allocation3 + $0x3], %s1283_s30, %s1283_s30, %s1282_s25 }
  0x95   : > { %p1284_p11 = scmp.lt.s32.totalorder %s1058_s16, 63  ;;  %p1285_p12 = scmp.gt.s32.totalorder %s1075_s22, 0 }
  0x96   : > { %p1286_p6 = scmp.lt.s32.totalorder %s1075_s22, 63  ;;  %s901_s6 = smov [#allocation2 + $0x5]  }
  0x97   : > { %s1309_s7 = smov (!%p1284_p11, %s160_s7), 63  ;;  %s191_s19 = sshll.u32 %s901_s6, 4  ;;  %s192_s19 = int_to_ptr.vmem [resolvable:$true] %s191_s19 }
  0x98   : > { %s179_s28 = scalar_select %p1285_p12, %s1075_s22, 0 }
  0x99   : > { %s163_s3 = sshrl.u32 %s1309_s7, 3  ;;  %s164_s13 = sand.u32 7, %s1309_s7  }
  0x9a   : > { %s165_s11 = smul.u32 48, %s163_s3  ;;  %s1311_s28 = smov (!%p1286_p6, %s179_s28), 63 }
  0x9b   : > { %s182_s21 = sshrl.u32 %s1311_s28, 3  ;;  %s183_s8 = sand.u32 7, %s1311_s28  }
  0x9c   : > { %s166_s27 = sadd.s32 %s165_s11, %s164_s13 }
  0x9d   : > { %s488_s20 = sshll.u32 %s166_s27, 4 }
  0x9e   : > { %s168_s0 = scalar_lea.hbm %s1258_s1, %s488_s20 }
  0x9f   : > { %s691_s10 = scalar_lea.hbm %s168_s0, 96  ;;  %p694_p10 = scmp.lt.u32.totalorder %s168_s0, %s1258_s1 }
  0xa0   : > { %p692_p8 = scmp.ne.s32.totalorder %s168_s0, %s691_s10  ;;  %p695_p13 = scmp.lt.u32.totalorder %s1006_s14, %s691_s10 }
  0xa1   : > { %p697_p4 = scmp.lt.u32.totalorder %s691_s10, %s168_s0 }
  0xa2   : > { %p696_p3 = por %p695_p13, %p694_p10 }
  0xa4   : > { %p698_p0 = por %p697_p4, %p696_p3 }
  0xa6   : > { %p699_p1 = pnand %p698_p0, %p692_p8 }
  0xa8   : > { %702 = shalt.err (!%p699_p1)  }
  0xa9   : > { %s703_s22 = scalar_lea.vmem %s173_s17, 96  ;;  %p708_p5 = scmp.lt.s32.totalorder %s173_s17, %s987_s9 }
  0xaa   : > { %p704_p2 = scmp.ne.s32.totalorder %s173_s17, %s703_s22  ;;  %p709_p11 = scmp.lt.s32.totalorder %s1015_s18, %s703_s22 }
  0xac   : > { %p710_p12 = por %p709_p11, %p708_p5 }
  0xae   : > { %p711_p6 = pnand %p710_p12, %p704_p2 }
  0xb0   : > { %714 = shalt.err (!%p711_p6)  }
  0xb1   : > { %175 = dma.hbm_to_vmem [thread:$0]  %s168_s0, 96, %s173_s17, [#allocation3 + $0x4], %s1283_s30, %s1283_s30, %s1282_s25 }
  0xb2   : > { %s184_s23 = smul.u32 48, %s182_s21  ;;  %s195_s15 = sadd.s32 6, %s979_s5 }
  0xb3   : > { %s1125_s28 = sld [smem:[#allocation5 + %s195_s15]]  ;;  %s214_s20 = sadd.s32 7, %s979_s5 }
  0xb4   : > { %s185_s3 = sadd.s32 %s184_s23, %s183_s8 }
  0xb5   : > { %s494_s13 = sshll.u32 %s185_s3, 4 }
  0xb6   : > { %s187_s6 = scalar_lea.hbm %s1258_s1, %s494_s13 }
  0xb7   : > { %s715_s26 = scalar_lea.hbm %s187_s6, 96  ;;  %p718_p10 = scmp.lt.u32.totalorder %s187_s6, %s1258_s1 }
  0xb8   : > { %p716_p8 = scmp.ne.s32.totalorder %s187_s6, %s715_s26  ;;  %p719_p13 = scmp.lt.u32.totalorder %s1006_s14, %s715_s26 }
  0xb9   : > { %p721_p4 = scmp.lt.u32.totalorder %s715_s26, %s187_s6 }
  0xba   : > { %p720_p3 = por %p719_p13, %p718_p10 }
  0xbc   : > { %p722_p0 = por %p721_p4, %p720_p3 }
  0xbe   : > { %p723_p1 = pnand %p722_p0, %p716_p8 }
  0xc0   : > { %726 = shalt.err (!%p723_p1)  }
  0xc1   : > { %s727_s17 = scalar_lea.vmem %s192_s19, 96  ;;  %p732_p5 = scmp.lt.s32.totalorder %s192_s19, %s987_s9 }
  0xc2   : > { %p728_p2 = scmp.ne.s32.totalorder %s192_s19, %s727_s17  ;;  %p733_p11 = scmp.lt.s32.totalorder %s1015_s18, %s727_s17 }
  0xc4   : > { %p734_p12 = por %p733_p11, %p732_p5 }
  0xc6   : > { %p735_p6 = pnand %p734_p12, %p728_p2 }
  0xc8   : > { %738 = shalt.err (!%p735_p6)  }
  0xc9   : > { %194 = dma.hbm_to_vmem [thread:$0]  %s187_s6, 96, %s192_s19, [#allocation3 + $0x5], %s1283_s30, %s1283_s30, %s1282_s25 }
  0xca   : > { %s1140_s5 = sld [smem:[#allocation5 + %s214_s20]]  ;;  %p197_p8 = scmp.gt.s32.totalorder %s1125_s28, 0 }
  0xcb   : > { %p495_p10 = scmp.lt.s32.totalorder %s1125_s28, 63  ;;  %s902_s21 = smov [#allocation2 + $0x6]  }
  0xcc   : > { %s1313_s28 = smov (!%p197_p8, %s1125_s28), 0  ;;  %s210_s0 = sshll.u32 %s902_s21, 4  ;;  %s211_s0 = int_to_ptr.vmem [resolvable:$true] %s210_s0 }
  0xcd   : > { %s1315_s28 = smov (!%p495_p10, %s1313_s28), 63 }
  0xce   : > { %s201_s8 = sshrl.u32 %s1315_s28, 3  ;;  %s202_s7 = sand.u32 7, %s1315_s28  }
  0xcf   : > { %s203_s12 = smul.u32 48, %s201_s8 }
  0xd0   : > { %p216_p13 = scmp.gt.s32.totalorder %s1140_s5, 0 }
  0xd1   : > { %s204_s23 = sadd.s32 %s203_s12, %s202_s7 }
  0xd2   : > { %s217_s22 = scalar_select %p216_p13, %s1140_s5, 0 }
  0xd3   : > { %s500_s19 = sshll.u32 %s204_s23, 4 }
  0xd4   : > { %s206_s13 = scalar_lea.hbm %s1258_s1, %s500_s19 }
  0xd5   : > { %s739_s11 = scalar_lea.hbm %s206_s13, 96  ;;  %p742_p0 = scmp.lt.u32.totalorder %s206_s13, %s1258_s1 }
  0xd6   : > { %p740_p4 = scmp.ne.s32.totalorder %s206_s13, %s739_s11  ;;  %p743_p1 = scmp.lt.u32.totalorder %s1006_s14, %s739_s11 }
  0xd7   : > { %p745_p5 = scmp.lt.u32.totalorder %s739_s11, %s206_s13 }
  0xd8   : > { %p744_p2 = por %p743_p1, %p742_p0 }
  0xda   : > { %p746_p11 = por %p745_p5, %p744_p2 }
  0xdc   : > { %p747_p12 = pnand %p746_p11, %p740_p4 }
  0xde   : > { %750 = shalt.err (!%p747_p12)  }
  0xdf   : > { %s751_s28 = scalar_lea.vmem %s211_s0, 96  ;;  %p756_p8 = scmp.lt.s32.totalorder %s211_s0, %s987_s9 }
  0xe0   : > { %p752_p6 = scmp.ne.s32.totalorder %s211_s0, %s751_s28  ;;  %p757_p10 = scmp.lt.s32.totalorder %s1015_s18, %s751_s28 }
  0xe2   : > { %p758_p13 = por %p757_p10, %p756_p8 }
  0xe4   : > { %p759_p3 = pnand %p758_p13, %p752_p6 }
  0xe6   : > { %762 = shalt.err (!%p759_p3)  }
  0xe7   : > { %213 = dma.hbm_to_vmem [thread:$0]  %s206_s13, 96, %s211_s0, [#allocation3 + $0x6], %s1283_s30, %s1283_s30, %s1282_s25 }
  0xe8   : > { %p1287_p0 = scmp.lt.s32.totalorder %s1140_s5, 63  ;;  %s903_s20 = smov [#allocation2 + $0x7]  }
  0xe9   : > { %s229_s26 = sshll.u32 %s903_s20, 4  ;;  %s230_s26 = int_to_ptr.vmem [resolvable:$true] %s229_s26 }
  0xea   : > { %s1317_s22 = smov (!%p1287_p0, %s217_s22), 63 }
  0xeb   : > { %s220_s16 = sshrl.u32 %s1317_s22, 3  ;;  %s221_s10 = sand.u32 7, %s1317_s22  }
  0xec   : > { %s222_s17 = smul.u32 48, %s220_s16 }
  0xee   : > { %s223_s21 = sadd.s32 %s222_s17, %s221_s10 }
  0xef   : > { %s506_s8 = sshll.u32 %s223_s21, 4 }
  0xf0   : > { %s225_s23 = scalar_lea.hbm %s1258_s1, %s506_s8 }
  0xf1   : > { %s763_s19 = scalar_lea.hbm %s225_s23, 96  ;;  %p766_p4 = scmp.lt.u32.totalorder %s225_s23, %s1258_s1 }
  0xf2   : > { %p764_p3 = scmp.ne.s32.totalorder %s225_s23, %s763_s19  ;;  %p767_p1 = scmp.lt.u32.totalorder %s1006_s14, %s763_s19 }
  0xf3   : > { %p769_p5 = scmp.lt.u32.totalorder %s763_s19, %s225_s23 }
  0xf4   : > { %p768_p2 = por %p767_p1, %p766_p4 }
  0xf6   : > { %p770_p11 = por %p769_p5, %p768_p2 }
  0xf8   : > { %p771_p12 = pnand %p770_p11, %p764_p3 }
  0xfa   : > { %774 = shalt.err (!%p771_p12)  }
  0xfb   : > { %s775_s5 = scalar_lea.vmem %s230_s26, 96  ;;  %p780_p8 = scmp.lt.s32.totalorder %s230_s26, %s987_s9 }
  0xfc   : > { %p776_p6 = scmp.ne.s32.totalorder %s230_s26, %s775_s5  ;;  %p781_p10 = scmp.lt.s32.totalorder %s1015_s18, %s775_s5 }
  0xfe   : > { %p782_p13 = por %p781_p10, %p780_p8 }
 0x100   : > { %p783_p0 = pnand %p782_p13, %p776_p6 }
 0x102   : > { %786 = shalt.err (!%p783_p0)  }
 0x103   : > { %232 = dma.hbm_to_vmem [thread:$0]  %s225_s23, 96, %s230_s26, [#allocation3 + $0x7], %s1283_s30, %s1283_s30, %s1282_s25 }
 0x104   : > { %s1288_s14 = smul.u32 24, %s976_s4 }
 0x106   : > { %s75_s0 = scalar_lea.vmem [#allocation6], %s1288_s14  ;;  %s1289_s22 = smov %s1288_s14 }
 0x107   : > { %s1178_s13 = scalar_lea.vmem [#allocation8], %s1289_s22 }
 0x108   : > { %857 = dma.done.wait [#allocation3], 96 }
 0x109   : > { %858 = vsyncadd [#allocation3], 4294967200 }
 0x10a   : > { %859 = dma.done.wait [#allocation3 + $0x1], 96 }
 0x10b   : > { %860 = vsyncadd [#allocation3 + $0x1], 4294967200 }
 0x10c   : > { %861 = dma.done.wait [#allocation3 + $0x2], 96 }
 0x10d   : > { %862 = vsyncadd [#allocation3 + $0x2], 4294967200 }
 0x10e   : > { %863 = dma.done.wait [#allocation3 + $0x3], 96 }
 0x10f   : > { %864 = vsyncadd [#allocation3 + $0x3], 4294967200 }
 0x110   : > { %865 = dma.done.wait [#allocation3 + $0x4], 96 }
 0x111   : > { %866 = vsyncadd [#allocation3 + $0x4], 4294967200 }
 0x112   : > { %867 = dma.done.wait [#allocation3 + $0x5], 96 }
 0x113   : > { %868 = vsyncadd [#allocation3 + $0x5], 4294967200 }
 0x114   : > { %869 = dma.done.wait [#allocation3 + $0x6], 96 }
 0x115   : > { %870 = vsyncadd [#allocation3 + $0x6], 4294967200 }
 0x116   : > { %871 = dma.done.wait [#allocation3 + $0x7], 96 }
 0x117   : > { %872 = vsyncadd [#allocation3 + $0x7], 4294967200  ;;  %s536_s9 = smul.u32 384, %s891_s24  ;;  %s281_s18 = sshll.u32 %s75_s0, 4  ;;  %v249_v0 = vld [vmem:[#allocation2] sm:$0xff]  ;;  %v250_v1 = vld [vmem:[#allocation2 + $0x8] sm:$0xff]  ;;  %s1187_s18 = int_to_ptr.vmem [resolvable:$true] %s281_s18 }
 0x118   : > { %s295_s25 = sshll.u32 %s1178_s13, 4  ;;  %v251_v2 = vld [vmem:[#allocation2 + $0x10] sm:$0xff]  ;;  %s1290_s20 = sld [smem:[#allocation34_spill]]  ;;  %255 = vst [vmem:[%s75_s0] sm:$0xff] %v249_v0  ;;  %256 = vst [vmem:[%s75_s0 + $0x8] sm:$0xff] %v250_v1  ;;  %v252_v3 = vld [vmem:[#allocation2 + $0x18] sm:$0xff]  ;;  %s1194_s25 = int_to_ptr.vmem [resolvable:$true] %s295_s25 }
 0x119   : > { %s1185_s27 = scalar_lea.hbm %s1259_s2, %s536_s9  ;;  %257 = vst [vmem:[%s75_s0 + $0x10] sm:$0xff] %v251_v2  ;;  %v253_v4 = vld [vmem:[#allocation2 + $0x20] sm:$0xff]  ;;  %v254_v5 = vld [vmem:[#allocation2 + $0x28] sm:$0xff]  ;;  %258 = vst [vmem:[%s1178_s13] sm:$0xff] %v252_v3  ;;  %s262_s16 = scalar_lea.sflag [#allocation7], %s976_s4 }
 0x11a   : > { %259 = vst [vmem:[%s1178_s13 + $0x8] sm:$0xff] %v253_v4  ;;  %260 = vst [vmem:[%s1178_s13 + $0x10] sm:$0xff] %v254_v5  ;;  %s787_s10 = scalar_lea.vmem %s1187_s18, 384  ;;  %s904_s17 = smov [#allocation6]  }
 0x11b   : > { %p788_p3 = scmp.ne.s32.totalorder %s1187_s18, %s787_s10  ;;  %s791_s21 = sshll.u32 %s904_s17, 4  ;;  %s792_s21 = int_to_ptr.vmem [resolvable:$false] %s791_s21 }
 0x11c   : > { %s793_s8 = scalar_lea.vmem %s792_s21, 768  ;;  %p794_p2 = scmp.lt.s32.totalorder %s1187_s18, %s792_s21 }
 0x11d   : > { %p789_p4 = pnand %p788_p3, %p966_p7  ;;  %p795_p5 = scmp.lt.s32.totalorder %s793_s8, %s787_s10 }
 0x11e   : > { %s1192_s26 = scalar_lea.hbm %s1290_s20, %s536_s9 }
 0x11f   : > { %p790_p1 = pneg %p789_p4  ;;  %p796_p11 = por %p795_p5, %p794_p2 }
 0x121   : > { %p797_p12 = pnand %p796_p11, %p790_p1 }
 0x123   : > { %800 = shalt.err (!%p797_p12)
}
 0x124   : > { %s801_s7 = scalar_lea.hbm %s1185_s27, 384  ;;  %s805_s19 = scalar_lea.hbm %s1259_s2, 3072 }
 0x125   : > { %p802_p6 = scmp.ne.s32.totalorder %s1185_s27, %s801_s7  ;;  %p806_p13 = scmp.lt.u32.totalorder %s1185_s27, %s1259_s2 }
 0x126   : > { %p807_p0 = scmp.lt.u32.totalorder %s805_s19, %s801_s7  ;;  %p809_p4 = scmp.lt.u32.totalorder %s801_s7, %s1185_s27 }
 0x127   : > { %p803_p8 = pnand %p802_p6, %p966_p7 }
 0x128   : > { %p808_p3 = por %p807_p0, %p806_p13 }
 0x129   : > { %p804_p10 = pneg %p803_p8 }
 0x12a   : > { %p810_p1 = por %p809_p4, %p808_p3 }
 0x12c   : > { %p811_p2 = pnand %p810_p1, %p804_p10 }
 0x12e   : > { %814 = shalt.err (!%p811_p2)
}
 0x12f   : > { %538 = dma.vmem_to_hbm [thread:$0]  (%p966_p7), %s1187_s18, 384, %s1185_s27, %s262_s16  }
 0x130   : > { %s267_s5 = scalar_lea.sflag [#allocation9], %s976_s4  ;;  %s815_s14 = scalar_lea.vmem %s1194_s25, 384 }
 0x131   : > { %p816_p5 = scmp.ne.s32.totalorder %s1194_s25, %s815_s14  ;;  %s905_s0 = smov [#allocation8]  }
 0x132   : > { %s819_s22 = sshll.u32 %s905_s0, 4  ;;  %s820_s22 = int_to_ptr.vmem [resolvable:$false] %s819_s22 }
 0x133   : > { %p817_p11 = pnand %p816_p5, %p966_p7  ;;  %s821_s13 = scalar_lea.vmem %s820_s22, 768 }
 0x134   : > { %p822_p6 = scmp.lt.s32.totalorder %s1194_s25, %s820_s22  ;;  %p823_p8 = scmp.lt.s32.totalorder %s821_s13, %s815_s14 }
 0x135   : > { %p818_p12 = pneg %p817_p11 }
 0x136   : > { %p824_p10 = por %p823_p8, %p822_p6 }
 0x138   : > { %p825_p13 = pnand %p824_p10, %p818_p12 }
 0x13a   : > { %828 = shalt.err (!%p825_p13)
}
 0x13b   : > { %s829_s4 = scalar_lea.hbm %s1192_s26, 384  ;;  %s833_s30 = scalar_lea.hbm %s1290_s20, 3072 }
 0x13c   : > { %p830_p0 = scmp.ne.s32.totalorder %s1192_s26, %s829_s4  ;;  %p834_p1 = scmp.lt.u32.totalorder %s1192_s26, %s1290_s20 }
 0x13d   : > { %p835_p2 = scmp.lt.u32.totalorder %s833_s30, %s829_s4  ;;  %p837_p11 = scmp.lt.u32.totalorder %s829_s4, %s1192_s26 }
 0x13e   : > { %p831_p3 = pnand %p830_p0, %p966_p7 }
 0x13f   : > { %p836_p5 = por %p835_p2, %p834_p1 }
 0x140   : > { %p832_p4 = pneg %p831_p3 }
 0x141   : > { %p838_p12 = por %p837_p11, %p836_p5 }
 0x143   : > { %p839_p6 = pnand %p838_p12, %p832_p4 }
 0x145   : > { %842 = shalt.err (!%p839_p6)
}
 0x146   : > { %539 = dma.vmem_to_hbm [thread:$0]  (%p966_p7), %s1194_s25, 384, %s1192_s26, %s267_s5  }
 0x147 PF: > { %s1291_s6 = sld [smem:[#allocation29_spill]]  ;;  %p549_p8 = scmp.ge.s32.totalorder %s891_s24, 1 }
 0x149   : > { %p543_p10 = pnand %p549_p8, %p970_p9 }
 0x14d   : > { %s307_s16 = sand.u32 1, %s1291_s6  }
 0x14e   : > { %s308_s10 = scalar_lea.sflag [#allocation7], %s307_s16 }
 0x14f   : > { %874 = dma.done.wait (!%p543_p10), %s308_s10, 384  }
 0x150   : > { %876 = vsyncadd (!%p543_p10), %s308_s10, 4294966912  ;;  %s317_s17 = scalar_lea.sflag [#allocation9], %s307_s16 }
 0x151   : > { %878 = dma.done.wait (!%p543_p10), %s317_s17, 384  }
 0x152   : > { %880 = vsyncadd (!%p543_p10), %s317_s17, 4294966912  ;;  %s1293_s24 = sld [smem:[#allocation31_spill]]  ;;  %s1294_s22 = sld [smem:[#allocation30_spill]] }
 0x153   : > { %s1295_s23 = sld [smem:[#allocation32_spill]] }
 0x158   : > { %p21_p13 = scmp.ge.s32.totalorder %s1293_s24, 9  }
 0x15a   :  { %23 = sbr.rel (!%p21_p13) target bundleno = 17 (0x11), region = 90 }
 0x161   :  { %322 = vsyncpa [#allocation7], 1 }
 0x162   :  { %324 = vsyncpa [#allocation7 + $0x1], 1 }
 0x163   :  { %325 = vsyncpa [#allocation9], 1 }
 0x164   :  { %327 = vsyncpa [#allocation9 + $0x1], 1 }
 0x165   :  { %328 = vsyncmov [#allocation3] }
 0x168   :  { %s329_s29 = vpop.sfrf %328 }
 0x169   :  { %p511_p7 = scmp.ne.s32.totalorder %s329_s29, 0 }
 0x16b   :  { %333 = shalt.err (%p511_p7)  }
 0x16c   :  { %335 = vsyncmov [#allocation3 + $0x1] }
 0x16f   :  { %s336_s25 = vpop.sfrf %335 }
 0x170   :  { %p512_p9 = scmp.ne.s32.totalorder %s336_s25, 0 }
 0x172   :  { %340 = shalt.err (%p512_p9)  }
 0x173   :  { %342 = vsyncmov [#allocation3 + $0x2] }
 0x176   :  { %s343_s26 = vpop.sfrf %342 }
 0x177   :  { %p513_p0 = scmp.ne.s32.totalorder %s343_s26, 0 }
 0x179   :  { %347 = shalt.err (%p513_p0)  }
 0x17a   :  { %349 = vsyncmov [#allocation3 + $0x3] }
 0x17d   :  { %s350_s21 = vpop.sfrf %349 }
 0x17e   :  { %p514_p3 = scmp.ne.s32.totalorder %s350_s21, 0 }
 0x180   :  { %354 = shalt.err (%p514_p3)  }
 0x181   :  { %356 = vsyncmov [#allocation3 + $0x4] }
 0x184   :  { %s357_s1 = vpop.sfrf %356 }
 0x185   :  { %p515_p4 = scmp.ne.s32.totalorder %s357_s1, 0 }
 0x187   :  { %361 = shalt.err (%p515_p4)  }
 0x188   :  { %363 = vsyncmov [#allocation3 + $0x5] }
 0x18b   :  { %s364_s2 = vpop.sfrf %363 }
 0x18c   :  { %p516_p1 = scmp.ne.s32.totalorder %s364_s2, 0 }
 0x18e   :  { %368 = shalt.err (%p516_p1)  }
 0x18f   :  { %370 = vsyncmov [#allocation3 + $0x6] }
 0x192   :  { %s371_s24 = vpop.sfrf %370 }
 0x193   :  { %p517_p2 = scmp.ne.s32.totalorder %s371_s24, 0 }
 0x195   :  { %375 = shalt.err (%p517_p2)  }
 0x196   :  { %377 = vsyncmov [#allocation3 + $0x7] }
 0x199   :  { %s378_s20 = vpop.sfrf %377 }
 0x19a   :  { %p518_p5 = scmp.ne.s32.totalorder %s378_s20, 0 }
 0x19c   :  { %382 = shalt.err (%p518_p5)  }

</bundles_post_ra>
